<compile_context>
chip_gen: v5e
topology: v5e:2x2
jax: 0.10.0
libtpu: 0.0.40
codegen_flags: <defaults>
</compile_context>

<pallas_src>
import functools

import jax
import jax.numpy as jnp
from jax.experimental import pallas as pl
from jax.experimental.pallas import tpu as pltpu


def _round_up(x: int, m: int) -> int:
    return ((x + m - 1) // m) * m


def _choose_tile_b(batch: int) -> int:
    """Batch tile: >=128 rows to fill the MXU M dimension once batch allows."""
    b8 = _round_up(batch, 8)
    for t in (512, 256, 128):
        if b8 >= t:
            return t
    return b8


# --------------------------------------------------------------------------- #
# Feature-detect pipeline_mode=pl.Buffered(1) (single-buffered resident params)
# --------------------------------------------------------------------------- #
_single_buffer_flag = None


def _single_buffer_params_supported() -> bool:
    global _single_buffer_flag
    if _single_buffer_flag is None:
        try:
            def _probe_kernel(x_ref, w_ref, o_ref):
                o_ref[...] = x_ref[...] + w_ref[...]

            fn = pl.pallas_call(
                _probe_kernel,
                out_shape=jax.ShapeDtypeStruct((16, 128), jnp.float32),
                grid=(2,),
                in_specs=[
                    pl.BlockSpec((8, 128), lambda i: (i, 0)),
                    pl.BlockSpec((8, 128), lambda i: (0, 0),
                                 pipeline_mode=pl.Buffered(buffer_count=1)),
                ],
                out_specs=pl.BlockSpec((8, 128), lambda i: (i, 0)),
            )
            jax.block_until_ready(
                fn(jnp.zeros((16, 128), jnp.float32),
                   jnp.zeros((8, 128), jnp.float32)))
            _single_buffer_flag = True
        except Exception:  # older JAX without pipeline_mode / Buffered(1)
            _single_buffer_flag = False
    return _single_buffer_flag


# --------------------------------------------------------------------------- #
# Fused kernel: refs = (x, w0, b0, ..., w_{L-1}, b_{L-1}, out, act_scratch)
# --------------------------------------------------------------------------- #
_SCRATCH_ANCHOR_BYTES = 128 * 1024  # anchor activations > 32 vregs in VMEM


def _mlp_fused_kernel(*refs, num_layers: int):
    x_ref = refs[0]
    o_ref = refs[1 + 2 * num_layers]
    act_ref = refs[2 + 2 * num_layers]
    param_refs = refs[1:1 + 2 * num_layers]

    h = x_ref[...]                                   # (TILE_B, K0_pad) f32
    for i in range(num_layers):                      # static unroll over layers
        w = param_refs[2 * i][...]                   # (K_pad, N_pad) bf16
        b = param_refs[2 * i + 1][...]               # (1, N_pad)     f32
        n_pad = w.shape[1]
        # bf16 operands feed the MXU at full rate; accumulation stays f32.
        y = jnp.dot(h.astype(jnp.bfloat16), w,
                    preferred_element_type=jnp.float32) + b
        if i != num_layers - 1:
            y = jnp.maximum(y, 0.0)                  # ReLU in f32 (VPU)
            if y.shape[0] * n_pad * 4 > _SCRATCH_ANCHOR_BYTES:
                # Large tile: route through VMEM scratch to bound live ranges.
                act_ref[:, :n_pad] = y
                h = act_ref[:, :n_pad]
            else:
                h = y
        else:
            o_ref[...] = y.astype(o_ref.dtype)


def mlp_fused_pallas(x_p, padded_params, *, tile_b, single_buffer_params):
    """x_p: (B_pad, K0_pad) f32; padded_params: [(w (K_pad,N_pad) bf16, b (1,N_pad) f32)]."""
    B_pad, K_pad = x_p.shape
    assert B_pad % tile_b == 0
    num_layers = len(padded_params)
    n_out_pad = padded_params[-1][0].shape[1]
    max_n_pad = max(w.shape[1] for w, _ in padded_params)

    def param_spec(shape):
        # Grid-invariant (always block (0, 0)) -> keep VMEM-resident; if the
        # runtime supports it, single-buffer to halve parameter VMEM (v7x).
        if single_buffer_params:
            return pl.BlockSpec(shape, lambda i: (0, 0),
                                pipeline_mode=pl.Buffered(buffer_count=1))
        return pl.BlockSpec(shape, lambda i: (0, 0))

    args = [x_p]
    in_specs = [pl.BlockSpec((tile_b, K_pad), lambda i: (i, 0))]
    param_bytes = 0
    flops = 0
    for w, b in padded_params:
        args += [w, b]
        in_specs += [param_spec(w.shape), param_spec(b.shape)]
        param_bytes += w.size * w.dtype.itemsize + b.size * b.dtype.itemsize
        flops += 2 * B_pad * w.shape[0] * w.shape[1]

    # Explicit VMEM budget (v7x has only 64 MiB physical / 32 MiB default scoped).
    tile_io_bytes = tile_b * (K_pad + n_out_pad) * 4
    scratch_bytes = tile_b * max_n_pad * 4
    buf_factor = 1 if single_buffer_params else 2
    budget = param_bytes * buf_factor + 2 * tile_io_bytes + scratch_bytes
    vmem_limit = int(min(max(2 * budget + (8 << 20), 32 << 20), 64 << 20))

    bytes_accessed = (x_p.size * x_p.dtype.itemsize + param_bytes
                      + B_pad * n_out_pad * 4)

    kernel = functools.partial(_mlp_fused_kernel, num_layers=num_layers)
    return pl.pallas_call(
        kernel,
        out_shape=jax.ShapeDtypeStruct((B_pad, n_out_pad), jnp.float32),
        grid=(B_pad // tile_b,),
        in_specs=in_specs,
        out_specs=pl.BlockSpec((tile_b, n_out_pad), lambda i: (i, 0)),
        scratch_shapes=[pltpu.VMEM((tile_b, max_n_pad), jnp.float32)],
        compiler_params=pltpu.CompilerParams(
            dimension_semantics=("parallel",),   # shard batch tiles across TCs
            vmem_limit_bytes=vmem_limit,
        ),
        cost_estimate=pl.CostEstimate(
            flops=flops, transcendentals=0, bytes_accessed=bytes_accessed),
    )(*args)


def _mlps_forward(x, padded_params, *, out_dim, single_buffer_params):
    """Flatten leading dims, pad to tile-aligned shapes, run fused kernel, slice."""
    lead = x.shape[:-1]
    K = x.shape[-1]
    x2 = x.reshape(-1, K)
    B = x2.shape[0]

    tile_b = _choose_tile_b(B)
    B_pad = _round_up(B, tile_b)
    K_pad = padded_params[0][0].shape[0]   # round_up(in_dim, 8), often == in_dim

    if (B_pad, K_pad) != (B, K):
        x2 = jnp.zeros((B_pad, K_pad), x2.dtype).at[:B, :K].set(x2)

    y_p = mlp_fused_pallas(x2, padded_params, tile_b=tile_b,
                           single_buffer_params=single_buffer_params)
    return y_p[:B, :out_dim].reshape(lead + (out_dim,))


class MLPsPallas:
    """Pallas port of SOP/overlap/CG.py::MLPs (stack of Linear + ReLU)."""

    def __init__(self, in_dim, mlps, key):
        self.n_layers = len(mlps)
        self.out_dim = mlps[-1]
        self.params = []         # PyTorch-layout f32 params, for the reference
        self.padded_params = []  # pre-transposed, lane-padded, bf16 weights

        cur_in = in_dim
        cur_in_pad = _round_up(in_dim, 8)   # layer-0 contraction only needs x8
        for i, out_dim in enumerate(mlps):
            key, wk, bk = jax.random.split(key, 3)
            bound = 1.0 / (cur_in ** 0.5)   # PyTorch nn.Linear default init range
            w = jax.random.uniform(wk, (out_dim, cur_in), jnp.float32, -bound, bound)
            b = jax.random.uniform(bk, (out_dim,), jnp.float32, -bound, bound)
            self.params.append((w, b))

            out_pad = _round_up(out_dim, 128)
            # W stored as (in_pad, out_pad) bf16 so the kernel does x @ W + b;
            # bias as a (1, out_pad) f32 row for lane-aligned broadcast.
            w_t = jnp.zeros((cur_in_pad, out_pad), jnp.bfloat16)
            w_t = w_t.at[:cur_in, :out_dim].set(w.T.astype(jnp.bfloat16))
            b_row = jnp.zeros((1, out_pad), jnp.float32)
            b_row = b_row.at[:, :out_dim].set(b)
            self.padded_params.append((w_t, b_row))

            cur_in, cur_in_pad = out_dim, out_pad

        self._forward = jax.jit(functools.partial(
            _mlps_forward,
            out_dim=self.out_dim,
            single_buffer_params=_single_buffer_params_supported()))

    def __call__(self, x):
        return self._forward(x, self.padded_params)

    def reference(self, x):
        # Plain-JAX f32 reference replicating PyTorch semantics exactly.
        for i, (w, b) in enumerate(self.params):
            x = x @ w.T + b
            if i != self.n_layers - 1:
                x = jnp.maximum(x, 0.0)
        return x


if __name__ == "__main__":
    key = jax.random.PRNGKey(0)
    key, xk, pk = jax.random.split(key, 3)

    batch = 192            # -> TILE_B=128, 2 batch-grid steps ("parallel")
    in_dim = 32
    mlps = [64, 48, 16]

    x = jax.random.normal(xk, (batch, in_dim), jnp.float32)

    model = MLPsPallas(in_dim, mlps, pk)

    out = jax.block_until_ready(model(x))
    ref = model.reference(x)

    assert out.shape == (batch, mlps[-1]), out.shape
    # bf16 matmul operands (f32 accumulation) vs f32 reference -> loosened tol.
    assert jnp.allclose(out, ref, atol=5e-2, rtol=5e-2), (
        "mismatch vs reference, max abs err = "
        f"{float(jnp.max(jnp.abs(out - ref)))}")

    print("KERNEL_OK")
</pallas_src>

<mosaic_0001>
module attributes {stable_mosaic.version = 11 : i64} {
  func.func @_probe_kernel(%arg0: i32, %arg1: memref<8x128xf32, #tpu.memory_space<vmem>>, %arg2: memref<8x128xf32, #tpu.memory_space<vmem>>, %arg3: memref<8x128xf32, #tpu.memory_space<vmem>>) attributes {dimension_semantics = [#tpu.dimension_semantics<arbitrary>], iteration_bounds = array<i64: 2>, scalar_prefetch = 0 : i64, scratch_operands = 0 : i64, tpu.core_type = #tpu.core_type<tc>, window_params = [{transform_indices = @transform_0, window_bounds = array<i64: 8, 128>}, {pipeline_mode = #tpu.pipeline_mode<synchronous>, transform_indices = @transform_1, window_bounds = array<i64: 8, 128>}, {transform_indices = @transform_2, window_bounds = array<i64: 8, 128>}]} {
    %c0 = arith.constant 0 : index
    %c0_0 = arith.constant 0 : index
    %0 = vector.load %arg1[%c0, %c0_0] : memref<8x128xf32, #tpu.memory_space<vmem>>, vector<8x128xf32>
    %c0_1 = arith.constant 0 : index
    %c0_2 = arith.constant 0 : index
    %1 = vector.load %arg2[%c0_1, %c0_2] : memref<8x128xf32, #tpu.memory_space<vmem>>, vector<8x128xf32>
    %2 = arith.addf %0, %1 : vector<8x128xf32>
    %c0_3 = arith.constant 0 : index
    %c0_4 = arith.constant 0 : index
    %3 = vector.load %arg3[%c0_3, %c0_4] : memref<8x128xf32, #tpu.memory_space<vmem>>, vector<8x128xf32>
    tpu.vector_store %arg3[%c0_3, %c0_4], %2 {strides = array<i32>} : memref<8x128xf32, #tpu.memory_space<vmem>>, vector<8x128xf32>,
    return
  }
  func.func @transform_0(%arg0: i32) -> (i32, i32) {
    %c0_i32 = arith.constant 0 : i32
    %c0_i32_0 = arith.constant 0 : i32
    return %arg0, %c0_i32 : i32, i32
  }
  func.func @transform_1(%arg0: i32) -> (i32, i32) {
    %c0_i32 = arith.constant 0 : i32
    %c0_i32_0 = arith.constant 0 : i32
    %c0_i32_1 = arith.constant 0 : i32
    return %c0_i32, %c0_i32_0 : i32, i32
  }
  func.func @transform_2(%arg0: i32) -> (i32, i32) {
    %c0_i32 = arith.constant 0 : i32
    %c0_i32_0 = arith.constant 0 : i32
    return %arg0, %c0_i32 : i32, i32
  }
}

module attributes {stable_mosaic.version = 11 : i64} {
  func.func @_mlp_fused_kernel(%arg0: i32, %arg1: memref<128x32xf32, #tpu.memory_space<vmem>>, %arg2: memref<32x128xbf16, #tpu.memory_space<vmem>>, %arg3: memref<1x128xf32, #tpu.memory_space<vmem>>, %arg4: memref<128x128xbf16, #tpu.memory_space<vmem>>, %arg5: memref<1x128xf32, #tpu.memory_space<vmem>>, %arg6: memref<128x128xbf16, #tpu.memory_space<vmem>>, %arg7: memref<1x128xf32, #tpu.memory_space<vmem>>, %arg8: memref<128x128xf32, #tpu.memory_space<vmem>>, %arg9: memref<128x128xf32, #tpu.memory_space<vmem>>) attributes {dimension_semantics = [#tpu.dimension_semantics<parallel>], iteration_bounds = array<i64: 2>, scalar_prefetch = 0 : i64, scratch_operands = 1 : i64, tpu.core_type = #tpu.core_type<tc>, window_params = [{transform_indices = @transform_0, window_bounds = array<i64: 128, 32>}, {pipeline_mode = #tpu.pipeline_mode<synchronous>, transform_indices = @transform_1, window_bounds = array<i64: 32, 128>}, {pipeline_mode = #tpu.pipeline_mode<synchronous>, transform_indices = @transform_2, window_bounds = array<i64: 1, 128>}, {pipeline_mode = #tpu.pipeline_mode<synchronous>, transform_indices = @transform_3, window_bounds = array<i64: 128, 128>}, {pipeline_mode = #tpu.pipeline_mode<synchronous>, transform_indices = @transform_4, window_bounds = array<i64: 1, 128>}, {pipeline_mode = #tpu.pipeline_mode<synchronous>, transform_indices = @transform_5, window_bounds = array<i64: 128, 128>}, {pipeline_mode = #tpu.pipeline_mode<synchronous>, transform_indices = @transform_6, window_bounds = array<i64: 1, 128>}, {transform_indices = @transform_7, window_bounds = array<i64: 128, 128>}]} {
    %c0 = arith.constant 0 : index
    %c0_0 = arith.constant 0 : index
    %0 = vector.load %arg1[%c0, %c0_0] : memref<128x32xf32, #tpu.memory_space<vmem>>, vector<128x32xf32>
    %c0_1 = arith.constant 0 : index
    %c0_2 = arith.constant 0 : index
    %1 = vector.load %arg2[%c0_1, %c0_2] : memref<32x128xbf16, #tpu.memory_space<vmem>>, vector<32x128xbf16>
    %c0_3 = arith.constant 0 : index
    %c0_4 = arith.constant 0 : index
    %2 = vector.load %arg3[%c0_3, %c0_4] : memref<1x128xf32, #tpu.memory_space<vmem>>, vector<1x128xf32>
    %3 = arith.truncf %0 : vector<128x32xf32> to vector<128x32xbf16>
    %cst = arith.constant dense<0.000000e+00> : vector<128x128xf32>
    %4 = tpu.matmul %3, %1, %cst {dimension_numbers = #tpu.dot_dimension_numbers<[1], [0], [0], [1], [0, 0, 1, 1], [], []>} : vector<128x32xbf16>, vector<32x128xbf16>, vector<128x128xf32> -> vector<128x128xf32>
    %5 = vector.broadcast %2 : vector<1x128xf32> to vector<128x128xf32>
    %6 = arith.addf %4, %5 : vector<128x128xf32>
    %cst_5 = arith.constant 0.000000e+00 : f32
    %7 = vector.broadcast %cst_5 : f32 to vector<128x128xf32>
    %8 = arith.maximumf %6, %7 : vector<128x128xf32>
    %c0_6 = arith.constant 0 : index
    %c0_7 = arith.constant 0 : index
    %9 = vector.load %arg4[%c0_6, %c0_7] : memref<128x128xbf16, #tpu.memory_space<vmem>>, vector<128x128xbf16>
    %c0_8 = arith.constant 0 : index
    %c0_9 = arith.constant 0 : index
    %10 = vector.load %arg5[%c0_8, %c0_9] : memref<1x128xf32, #tpu.memory_space<vmem>>, vector<1x128xf32>
    %11 = arith.truncf %8 : vector<128x128xf32> to vector<128x128xbf16>
    %cst_10 = arith.constant dense<0.000000e+00> : vector<128x128xf32>
    %12 = tpu.matmul %11, %9, %cst_10 {dimension_numbers = #tpu.dot_dimension_numbers<[1], [0], [0], [1], [0, 0, 1, 1], [], []>} : vector<128x128xbf16>, vector<128x128xbf16>, vector<128x128xf32> -> vector<128x128xf32>
    %13 = vector.broadcast %10 : vector<1x128xf32> to vector<128x128xf32>
    %14 = arith.addf %12, %13 : vector<128x128xf32>
    %cst_11 = arith.constant 0.000000e+00 : f32
    %15 = vector.broadcast %cst_11 : f32 to vector<128x128xf32>
    %16 = arith.maximumf %14, %15 : vector<128x128xf32>
    %c0_12 = arith.constant 0 : index
    %c0_13 = arith.constant 0 : index
    %17 = vector.load %arg6[%c0_12, %c0_13] : memref<128x128xbf16, #tpu.memory_space<vmem>>, vector<128x128xbf16>
    %c0_14 = arith.constant 0 : index
    %c0_15 = arith.constant 0 : index
    %18 = vector.load %arg7[%c0_14, %c0_15] : memref<1x128xf32, #tpu.memory_space<vmem>>, vector<1x128xf32>
    %19 = arith.truncf %16 : vector<128x128xf32> to vector<128x128xbf16>
    %cst_16 = arith.constant dense<0.000000e+00> : vector<128x128xf32>
    %20 = tpu.matmul %19, %17, %cst_16 {dimension_numbers = #tpu.dot_dimension_numbers<[1], [0], [0], [1], [0, 0, 1, 1], [], []>} : vector<128x128xbf16>, vector<128x128xbf16>, vector<128x128xf32> -> vector<128x128xf32>
    %21 = vector.broadcast %18 : vector<1x128xf32> to vector<128x128xf32>
    %22 = arith.addf %20, %21 : vector<128x128xf32>
    %c0_17 = arith.constant 0 : index
    %c0_18 = arith.constant 0 : index
    %23 = vector.load %arg8[%c0_17, %c0_18] : memref<128x128xf32, #tpu.memory_space<vmem>>, vector<128x128xf32>
    tpu.vector_store %arg8[%c0_17, %c0_18], %22 {strides = array<i32>} : memref<128x128xf32, #tpu.memory_space<vmem>>, vector<128x128xf32>,
    return
  }
  func.func @transform_0(%arg0: i32) -> (i32, i32) {
    %c0_i32 = arith.constant 0 : i32
    %c0_i32_0 = arith.constant 0 : i32
    return %arg0, %c0_i32 : i32, i32
  }
  func.func @transform_1(%arg0: i32) -> (i32, i32) {
    %c0_i32 = arith.constant 0 : i32
    %c0_i32_0 = arith.constant 0 : i32
    %c0_i32_1 = arith.constant 0 : i32
    return %c0_i32, %c0_i32_0 : i32, i32
  }
  func.func @transform_2(%arg0: i32) -> (i32, i32) {
    %c0_i32 = arith.constant 0 : i32
    %c0_i32_0 = arith.constant 0 : i32
    %c0_i32_1 = arith.constant 0 : i32
    return %c0_i32, %c0_i32_0 : i32, i32
  }
  func.func @transform_3(%arg0: i32) -> (i32, i32) {
    %c0_i32 = arith.constant 0 : i32
    %c0_i32_0 = arith.constant 0 : i32
    %c0_i32_1 = arith.constant 0 : i32
    return %c0_i32, %c0_i32_0 : i32, i32
  }
  func.func @transform_4(%arg0: i32) -> (i32, i32) {
    %c0_i32 = arith.constant 0 : i32
    %c0_i32_0 = arith.constant 0 : i32
    %c0_i32_1 = arith.constant 0 : i32
    return %c0_i32, %c0_i32_0 : i32, i32
  }
  func.func @transform_5(%arg0: i32) -> (i32, i32) {
    %c0_i32 = arith.constant 0 : i32
    %c0_i32_0 = arith.constant 0 : i32
    %c0_i32_1 = arith.constant 0 : i32
    return %c0_i32, %c0_i32_0 : i32, i32
  }
  func.func @transform_6(%arg0: i32) -> (i32, i32) {
    %c0_i32 = arith.constant 0 : i32
    %c0_i32_0 = arith.constant 0 : i32
    %c0_i32_1 = arith.constant 0 : i32
    return %c0_i32, %c0_i32_0 : i32, i32
  }
  func.func @transform_7(%arg0: i32) -> (i32, i32) {
    %c0_i32 = arith.constant 0 : i32
    %c0_i32_0 = arith.constant 0 : i32
    return %arg0, %c0_i32 : i32, i32
  }
}

</mosaic_0001>

<bundles_post_ra>
// kernel: tpu_custom_call.1
= control target key start
LH: loop header
LB: loop body
LE: loop exit
PB: predicated region body
PF: predicated region fallthrough
CT: control target
= control target key end

     0   :  { %7 = vsyncpa [#allocation3], 0  ;;  %s633_s0 = inlined_call_operand.hbm [shape: f32[16,128], index: 0, kind: input, shape index: {}]   ;;  %s634_s1 = inlined_call_operand.hbm [shape: f32[8,128], index: 1, kind: input, shape index: {}]   ;;  %s635_s2 = inlined_call_operand.hbm [shape: f32[16,128], index: 2, kind: output, shape index: {}]  }
   0x1   :  { %9 = vsyncpa [#allocation3 + $0x1], 0 }
   0x2   :  { %10 = vsyncpa [#allocation6], 0 }
   0x3   :  { %11 = vsyncpa [#allocation4], 0 }
   0x4   :  { %13 = vsyncpa [#allocation4 + $0x1], 0  ;;  %s495_s9 = smov 0   ;;  %s497_s10 = smov 0  }
   0x5   :  { %s499_s11 = smov 0   ;;  %s501_s12 = smov 0  }
   0x6 LB: > { %s516_s13 = sadd.s32 4294967295, %s477_s12   ;;  %s276_s14 = sadd.s32 4294967294, %s477_s12   ;;  %s477_s12 = sphi %s501_s12, %s645_s12   ;;  %s473_s11 = sphi %s499_s11, %s644_s11   ;;  %s469_s10 = sphi %s497_s10, %s643_s10   ;;  %s465_s9 = sphi %s495_s9, %s642_s9  }
   0x7   : > { %p39_p0 = scmp.ne.s32.totalorder %s469_s10, %s465_s9  ;;  %p40_p1 = scmp.eq.s32.totalorder %s516_s13, 0 }
   0x8   : > { %p84_p2 = scmp.eq.s32.totalorder %s516_s13, 1  ;;  %p90_p3 = scmp.eq.s32.totalorder %s276_s14, 1 }
   0x9   : > { %p525_p4 = por %p40_p1, %p39_p0  ;;  %p277_p5 = scmp.ge.s32.totalorder %s477_s12, 1 }
   0xa   : > { %p530_p6 = por %p90_p3, %p39_p0  ;;  %p97_p7 = scmp.lt.s32.totalorder %s477_s12, 3 }
   0xb   : > { %s109_s19 = sshll.u32 %s634_s1, 4  ;;  %s479_s21 = smov [#allocation5]   ;;  %s110_s19 = int_to_ptr.hbm [resolvable:$true] %s109_s19 }
   0xc   : > { %p538_p8 = pnand %p277_p5, %p97_p7  ;;  %s111_s22 = sshll.u32 %s479_s21, 4  ;;  %s112_s22 = int_to_ptr.vmem [resolvable:$true] %s111_s22 }
   0xd   : > { %s548_s23 = sadd.s32 1, %s477_s12   ;;  %s26_s24 = sadd.s32 1, %s473_s11 }
   0xe   : > { %p298_p10 = pneg %p538_p8  ;;  %s23_s25 = ssub.s32 %s477_s12, %s548_s23 }
   0xf   : > { %p24_p12 = scmp.eq.s32.totalorder %s23_s25, 0  ;;  %p33_p13 = scmp.ne.s32.totalorder %s473_s11, %s469_s10 }
  0x10   : > { %p299_p11 = pnand %p298_p10, %p40_p1  ;;  %p34_p0 = scmp.eq.s32.totalorder %s477_s12, 0 }
  0x11   : > { %s557_s26 = scalar_select %p24_p12, %s473_s11, %s26_s24  }
  0x12   : > { %301 = dma.hbm_to_vmem [thread:$0]  (!%p299_p11), %s110_s19, 128, %s112_s22, [#allocation6]  }
  0x13   : > { %p561_p3 = por %p84_p2, %p33_p13  ;;  %p311_p5 = scmp.lt.s32.totalorder %s477_s12, 2 }
  0x14   : > { %s122_s28 = sand.u32 1, %s473_s11   ;;  %s281_s29 = sshll.u32 %s477_s12, 3 }
  0x15   : > { %p35_p7 = por %p34_p0, %p33_p13  ;;  %s280_s30 = sshll.u32 %s122_s28, 3 }
  0x16   : > { %s130_s5 = scalar_lea.hbm %s633_s0, %s281_s29  ;;  %s126_s7 = scalar_lea.vmem [#allocation2], %s280_s30 }
  0x17   : > { %s132_s6 = sshll.u32 %s130_s5, 4  ;;  %s134_s8 = sshll.u32 %s126_s7, 4  ;;  %s133_s6 = int_to_ptr.hbm [resolvable:$true] %s132_s6  ;;  %s135_s8 = int_to_ptr.vmem [resolvable:$true] %s134_s8 }
  0x18   : > { %p571_p10 = pnand %p311_p5, %p35_p7  ;;  %s123_s17 = scalar_lea.sflag [#allocation3], %s122_s28 }
  0x19   : > { %s377_s18 = sshra.s32 %s133_s6, 4  ;;  %s384_s24 = scalar_lea.hbm %s633_s0, 16  ;;  %s378_s18 = int_to_ptr.hbm [resolvable:$true] %s377_s18 }
  0x1a   : > { %s379_s19 = scalar_lea.hbm %s378_s18, 8  ;;  %p381_p11 = pneg %p571_p10 }
  0x1b   : > { %p380_p2 = scmp.ne.s32.totalorder %s378_s18, %s379_s19  ;;  %p385_p0 = scmp.lt.s32.totalorder %s378_s18, %s633_s0 }
  0x1c   : > { %p386_p5 = scmp.lt.s32.totalorder %s384_s24, %s379_s19 }
  0x1d   : > { %p382_p12 = pnand %p381_p11, %p380_p2 }
  0x1e   : > { %p387_p7 = por %p386_p5, %p385_p0 }
  0x1f   : > { %p383_p13 = pneg %p382_p12 }
  0x21   : > { %p388_p9 = pnand %p387_p7, %p383_p13 }
  0x23   : > { %391 = shalt.err (!%p388_p9)
}
  0x24   : > { %305 = dma.hbm_to_vmem [thread:$0]  (!%p571_p10), %s133_s6, 128, %s135_s8, %s123_s17  }
  0x25   : > { %143 = sbr.rel (%p538_p8) target bundleno = 60 (0x3c), region = 28  ;;  %s588_s28 = sand.u32 (!%p538_p8), 1, %s469_s10  }
  0x26   : > { %s283_s30 = sshll.u32 (!%p538_p8), %s588_s28, 3  ;;  %s146_s3 = scalar_lea.sflag (!%p538_p8), [#allocation3], %s588_s28 }
  0x27   : > { %s149_s4 = scalar_lea.vmem (!%p538_p8), [#allocation2], %s283_s30 }
  0x2a   : > { %452 = dma.done.wait (%p525_p4), %s146_s3, 128  }
  0x2b   : > { %454 = vsyncadd (%p525_p4), %s146_s3, 4294967168 }
  0x2c   : > { %456 = dma.done.wait (%p40_p1), [#allocation6], 128  }
  0x2d   : > { %458 = vsyncadd (%p40_p1), [#allocation6], 4294967168  ;;  %s287_s20 = sshll.u32 %s516_s13, 3  ;;  %s175_s8 = scalar_lea.vmem [#allocation7], %s283_s30  ;;  %v176_v0 = vld [vmem:[%s149_s4] sm:$0xff]  ;;  %v177_v1 = vld [vmem:[#allocation5] sm:$0xff] }
  0x2e   : > { %s191_s7 = scalar_lea.hbm %s635_s2, %s287_s20  ;;  %s193_s14 = sshll.u32 %s175_s8, 4  ;;  %v178_v2 = vadd.f32 %v177_v1, %v176_v0  ;;  %s194_s14 = int_to_ptr.vmem [resolvable:$true] %s193_s14 }
  0x2f   : > { %s195_s17 = sshll.u32 %s191_s7, 4  ;;  %s181_s15 = scalar_lea.sflag [#allocation4], %s588_s28  ;;  %s196_s17 = int_to_ptr.hbm [resolvable:$true] %s195_s17 }
  0x30   : > { %179 = vst [vmem:[%s175_s8] sm:$0xff] %v178_v2  ;;  %s421_s18 = sshra.s32 %s196_s17, 4  ;;  %s427_s22 = scalar_lea.hbm %s635_s2, 16  ;;  %s422_s18 = int_to_ptr.hbm [resolvable:$true] %s421_s18 }
  0x31   : > { %s423_s19 = scalar_lea.hbm %s422_s18, 8  ;;  %p428_p9 = scmp.lt.s32.totalorder %s422_s18, %s635_s2 }
  0x32   : > { %p424_p1 = scmp.ne.s32.totalorder %s422_s18, %s423_s19  ;;  %p429_p10 = scmp.lt.s32.totalorder %s427_s22, %s423_s19 }
  0x34   : > { %p425_p4 = pnand %p424_p1, %p561_p3  ;;  %p430_p2 = por %p429_p10, %p428_p9 }
  0x36   : > { %p426_p8 = pneg %p425_p4 }
  0x38   : > { %p431_p11 = pnand %p430_p2, %p426_p8 }
  0x3a   : > { %434 = shalt.err (!%p431_p11)
}
  0x3b   : > { %296 = dma.vmem_to_hbm [thread:$0]  (%p561_p3), %s194_s14, 128, %s196_s17, %s181_s15  }
  0x3c PF: > { %s207_s29 = sand.u32 1, %s465_s9   ;;  %p641_p12 = scmp.ge.s32.totalorder %s477_s12, 2 }
  0x3d   : > { %s208_s28 = scalar_lea.sflag [#allocation4], %s207_s29 }
  0x3e   : > { %p307_p13 = pnand %p641_p12, %p530_p6 }
  0x40   : > { %p308_p0 = pneg %p307_p13 }
  0x42   : > { %460 = dma.done.wait (%p308_p0), %s208_s28, 128  }
  0x43   : > { %462 = vsyncadd (%p308_p0), %s208_s28, 4294967168  ;;  %p16_p5 = scmp.ge.s32.totalorder %s548_s23, 4   ;;  %s642_s9 = smov %s469_s10 }
  0x44   : > { %s643_s10 = smov %s473_s11  ;;  %s644_s11 = smov %s557_s26 }
  0x45   : > { %s645_s12 = smov %s548_s23  ;;  %18 = sbr.rel (!%p16_p5) target bundleno = 6 (0x6), region = 77 }
  0x4a   :  { %214 = vsyncpa [#allocation3], 1 }
  0x4b   :  { %216 = vsyncpa [#allocation3 + $0x1], 1 }
  0x4c   :  { %217 = vsyncpa [#allocation6], 1 }
  0x4d   :  { %218 = vsyncpa [#allocation4], 1 }
  0x4e   :  { %220 = vsyncpa [#allocation4 + $0x1], 1 }

// kernel: _mlps_forward.1
= control target key start
LH: loop header
LB: loop body
LE: loop exit
PB: predicated region body
PF: predicated region fallthrough
CT: control target
= control target key end

     0   :  { %s939_s24 = smov 0   ;;  %s1088_s0 = inlined_call_operand.vmem [shape: f32[256,32], index: 0, kind: input, shape index: {}]   ;;  %s1089_s1 = inlined_call_operand.vmem [shape: bf16[32,128], index: 1, kind: input, shape index: {}]   ;;  %s1090_s2 = inlined_call_operand.vmem [shape: f32[1,128], index: 2, kind: input, shape index: {}]   ;;  %s1091_s3 = inlined_call_operand.vmem [shape: bf16[128,128], index: 3, kind: input, shape index: {}]   ;;  %s1092_s4 = inlined_call_operand.vmem [shape: f32[1,128], index: 4, kind: input, shape index: {}]   ;;  %s1093_s5 = inlined_call_operand.vmem [shape: bf16[128,128], index: 5, kind: input, shape index: {}]   ;;  %s1094_s6 = inlined_call_operand.vmem [shape: f32[1,128], index: 6, kind: input, shape index: {}]   ;;  %s1095_s7 = inlined_call_operand.vmem [shape: f32[256,128], index: 7, kind: output, shape index: {}]  }
   0x1 LB: > { %s755_s25 = sadd.s32 4294967295, %s897_s24   ;;  %p759_p0 = scmp.ge.s32.totalorder %s897_s24, 1  ;;  %s897_s24 = sphi %s939_s24, %s17_s24  }
   0x2   : > { %p238_p1 = scmp.lt.s32.totalorder %s897_s24, 3 }
   0x4   : > { %p239_p2 = pnand %p759_p0, %p238_p1 }
   0x5   : > { %s760_s28 = sshll.u32 (!%p239_p2), %s755_s25, 4 }
   0x6   : > { %242 = sbr.rel (%p239_p2) target bundleno = 560 (0x230), region = 48  ;;  %p271_p3 = scmp.lt.s32.totalorder (!%p239_p2), %s760_s28, 31 }
   0xb   : > { %v847_v0 = vld [vmem:[%s1089_s1 + $0x8] sm:$0xff]  ;;  %v846_v1 = vld [vmem:[%s1089_s1] sm:$0xff]  ;;  %s1097_s28 = smov (!%p271_p3, %s760_s28), 31  ;;  %vm327_vm0 = vcmask 261120   ;;  %v855_v17 = vld [vmem:[%s1091_s3 + $0x38] sm:$0xff] }
   0xc   : > { %358 = vmatpush.bf16.msra.mxu0 %v847_v0  ;;  %s761_s8 = sshll.u32 %s1097_s28, 3  ;;  %493 = vmatpush.bf16.msra.mxu1 %v855_v17  ;;  %v854_v21 = vld [vmem:[%s1091_s3 + $0x30] sm:$0xff]  ;;  %v853_v22 = vld [vmem:[%s1091_s3 + $0x28] sm:$0xff]  ;;  %v852_v23 = vld [vmem:[%s1091_s3 + $0x20] sm:$0xff] }
   0xd   : > { %s961_s11 = scalar_lea.vmem %s1088_s0, %s761_s8  ;;  %864 = vmatpush.bf16.msra.mxu3 %v855_v17  ;;  %v851_v26 = vld [vmem:[%s1091_s3 + $0x18] sm:$0xff]  ;;  %v850_v28 = vld [vmem:[%s1091_s3 + $0x10] sm:$0xff]  ;;  %v849_v29 = vld [vmem:[%s1091_s3 + $0x8] sm:$0xff]  ;;  %s1067_s12 = scalar_lea.vmem %s1095_s7, %s761_s8 }
   0xe   : > { %v283_v2 = vld [vmem:[%s961_s11] sm:$0xff]  ;;  %v284_v3 = vld [vmem:[%s961_s11 + $0x8] sm:$0xff]  ;;  %v285_v5 = vld [vmem:[%s961_s11 + $0x10] sm:$0xff] }
   0xf   : > { %v304_v4 = vpack.c.bf16 %v284_v3, %v283_v2  ;;  %v286_v6 = vld [vmem:[%s961_s11 + $0x18] sm:$0xff]  ;;  %v287_v8 = vld [vmem:[%s961_s11 + $0x20] sm:$0xff]  ;;  %v288_v9 = vld [vmem:[%s961_s11 + $0x28] sm:$0xff] }
  0x10   : > { %359 = vmatpush.bf16.msra.mxu0 %v846_v1  ;;  %v305_v7 = vpack.c.bf16 %v286_v6, %v285_v5  ;;  %v306_v10 = vpack.c.bf16 %v288_v9, %v287_v8  ;;  %v289_v11 = vld [vmem:[%s961_s11 + $0x30] sm:$0xff]  ;;  %v290_v12 = vld [vmem:[%s961_s11 + $0x38] sm:$0xff]  ;;  %v291_v14 = vld [vmem:[%s961_s11 + $0x40] sm:$0xff]  ;;  %494 = vmatpush.bf16.msra.mxu1 %v854_v21 }
  0x11   : > { %v307_v13 = vpack.c.bf16 %v290_v12, %v289_v11  ;;  %v292_v15 = vld [vmem:[%s961_s11 + $0x48] sm:$0xff]  ;;  %v293_v18 = vld [vmem:[%s961_s11 + $0x50] sm:$0xff]  ;;  %v294_v19 = vld [vmem:[%s961_s11 + $0x58] sm:$0xff]  ;;  %865 = vmatpush.bf16.msra.mxu3 %v854_v21 }
  0x12   : > { %v308_v16 = vpack.c.bf16 %v292_v15, %v291_v14  ;;  %v309_v20 = vpack.c.bf16 %v294_v19, %v293_v18  ;;  %v295_v24 = vld [vmem:[%s961_s11 + $0x60] sm:$0xff]  ;;  %v296_v25 = vld [vmem:[%s961_s11 + $0x68] sm:$0xff]  ;;  %v297_v31 = vld [vmem:[%s961_s11 + $0x70] sm:$0xff] }
  0x13   : > { %772 = vmatmul.msk.bf16.vlgmr.msra.gmra.mxu0 %vm327_vm0, %v304_v4  ;;  %v310_v27 = vpack.c.bf16 %v296_v25, %v295_v24  ;;  %v848_v30 = vld [vmem:[%s1091_s3] sm:$0xff]  ;;  %v298_v32 = vld [vmem:[%s961_s11 + $0x78] sm:$0xff]  ;;  %v862_v14 = vld [vmem:[%s1093_s5 + $0x30] sm:$0xff] }
  0x14   : > { %495 = vmatpush.bf16.msra.mxu1 %v853_v22  ;;  %v311_v33 = vpack.c.bf16 %v298_v32, %v297_v31  ;;  %v1014_v35 = vld [vmem:[%s1090_s2] ss:$0 sm:$0xff]  ;;  %v859_v21 = vld [vmem:[%s1093_s5 + $0x18] sm:$0xff]  ;;  %v858_v25 = vld [vmem:[%s1093_s5 + $0x10] sm:$0xff] }
  0x15   : > { %866 = vmatpush.bf16.msra.mxu3 %v853_v22  ;;  %v860_v17 = vld [vmem:[%s1093_s5 + $0x20] sm:$0xff] }
  0x18   : > { %496 = vmatpush.bf16.msra.mxu1 %v852_v23 }
  0x19   : > { %867 = vmatpush.bf16.msra.mxu3 %v852_v23 }
  0x1c   : > { %497 = vmatpush.bf16.msra.mxu1 %v851_v26 }
  0x1d   : > { %868 = vmatpush.bf16.msra.mxu3 %v851_v26 }
  0x20   : > { %498 = vmatpush.bf16.msra.mxu1 %v850_v28 }
  0x21   : > { %869 = vmatpush.bf16.msra.mxu3 %v850_v28  ;;  %v856_v28 = vld [vmem:[%s1093_s5] sm:$0xff] }
  0x23   : > { %773 = vmatmul.msk.bf16.gmra.mxu0 %vm327_vm0, %v305_v7 }
  0x24   : > { %499 = vmatpush.bf16.msra.mxu1 %v849_v29 }
  0x25   : > { %870 = vmatpush.bf16.msra.mxu3 %v849_v29 }
  0x28   : > { %500 = vmatpush.bf16.msra.mxu1 %v848_v30 }
  0x29   : > { %871 = vmatpush.bf16.msra.mxu3 %v848_v30 }
  0x33   : > { %774 = vmatmul.msk.bf16.gmra.mxu0 %vm327_vm0, %v306_v10  ;;  %v863_v10 = vld [vmem:[%s1093_s5 + $0x38] sm:$0xff] }
  0x34   : > { %634 = vmatpush.bf16.msra.mxu2 %v863_v10  ;;  %872 = vmatpush.bf16.msrb.mxu3 %v863_v10 }
  0x38   : > { %635 = vmatpush.bf16.msra.mxu2 %v862_v14  ;;  %873 = vmatpush.bf16.msrb.mxu3 %v862_v14 }
  0x43   : > { %775 = vmatmul.msk.bf16.gmra.mxu0 %vm327_vm0, %v307_v13 }
  0x53   : > { %776 = vmatmul.msk.bf16.gmra.mxu0 %vm327_vm0, %v308_v16  ;;  %v861_v16 = vld [vmem:[%s1093_s5 + $0x28] sm:$0xff] }
  0x54   : > { %636 = vmatpush.bf16.msra.mxu2 %v861_v16  ;;  %874 = vmatpush.bf16.msrb.mxu3 %v861_v16 }
  0x58   : > { %637 = vmatpush.bf16.msra.mxu2 %v860_v17  ;;  %875 = vmatpush.bf16.msrb.mxu3 %v860_v17 }
  0x5c   : > { %638 = vmatpush.bf16.msra.mxu2 %v859_v21  ;;  %876 = vmatpush.bf16.msrb.mxu3 %v859_v21 }
  0x60   : > { %639 = vmatpush.bf16.msra.mxu2 %v858_v25  ;;  %877 = vmatpush.bf16.msrb.mxu3 %v858_v25 }
  0x63   : > { %777 = vmatmul.msk.bf16.gmra.mxu0 %vm327_vm0, %v309_v20 }
  0x73   : > { %778 = vmatmul.msk.bf16.gmra.mxu0 %vm327_vm0, %v310_v27  ;;  %v857_v27 = vld [vmem:[%s1093_s5 + $0x8] sm:$0xff] }
  0x74   : > { %640 = vmatpush.bf16.msra.mxu2 %v857_v27  ;;  %878 = vmatpush.bf16.msrb.mxu3 %v857_v27 }
  0x78   : > { %641 = vmatpush.bf16.msra.mxu2 %v856_v28  ;;  %879 = vmatpush.bf16.msrb.mxu3 %v856_v28  ;;  %v890_v28 = vld [vmem:[%s1094_s6] ss:$0 sm:$0xff] }
  0x83   : > { %779 = vmatmul.msk.bf16.gmra.mxu0 %vm327_vm0, %v311_v33 }
  0x90   : > { %v361_v34 = vpop.f32.mrf.mxu0 }
  0x91   : > { %v362_v36 = vadd.f32 %v1014_v35, %v361_v34 }
  0x93   : > { %v401_v39 = vmax.f32 %v362_v36, 0.0 }
  0x98   : > { %v363_v37 = vpop.f32.mrf.mxu0 }
  0x99   : > { %v364_v38 = vadd.f32 %v1014_v35, %v363_v37  ;;  %v889_v37 = vld [vmem:[%s1092_s4] ss:$0 sm:$0xff] }
  0x9b   : > { %v402_v40 = vmax.f32 %v364_v38, 0.0 }
  0x9d   : > { %v434_v41 = vpack.c.bf16 %v402_v40, %v401_v39 }
  0x9f   : > { %501 = vmatmul.bf16.vlgmr.msra.gmra.mxu1 %v434_v41 }
  0xa0   : > { %v366_v42 = vpop.f32.mrf.mxu0 }
  0xa1   : > { %v367_v43 = vadd.f32 %v1014_v35, %v366_v42 }
  0xa3   : > { %v403_v46 = vmax.f32 %v367_v43, 0.0 }
  0xa8   : > { %v368_v44 = vpop.f32.mrf.mxu0 }
  0xa9   : > { %v369_v45 = vadd.f32 %v1014_v35, %v368_v44 }
  0xab   : > { %v404_v47 = vmax.f32 %v369_v45, 0.0 }
  0xad   : > { %v435_v48 = vpack.c.bf16 %v404_v47, %v403_v46 }
  0xaf   : > { %506 = vmatmul.bf16.gmra.mxu1 %v435_v48 }
  0xb0   : > { %v371_v49 = vpop.f32.mrf.mxu0 }
  0xb1   : > { %v372_v50 = vadd.f32 %v1014_v35, %v371_v49 }
  0xb3   : > { %v405_v53 = vmax.f32 %v372_v50, 0.0 }
  0xb8   : > { %v373_v51 = vpop.f32.mrf.mxu0 }
  0xb9   : > { %v374_v52 = vadd.f32 %v1014_v35, %v373_v51 }
  0xbb   : > { %v406_v54 = vmax.f32 %v374_v52, 0.0 }
  0xbd   : > { %v436_v55 = vpack.c.bf16 %v406_v54, %v405_v53 }
  0xbf   : > { %511 = vmatmul.bf16.gmra.mxu1 %v436_v55 }
  0xc0   : > { %v376_v56 = vpop.f32.mrf.mxu0 }
  0xc1   : > { %v377_v57 = vadd.f32 %v1014_v35, %v376_v56 }
  0xc3   : > { %v407_v60 = vmax.f32 %v377_v57, 0.0 }
  0xc8   : > { %v378_v58 = vpop.f32.mrf.mxu0 }
  0xc9   : > { %v379_v59 = vadd.f32 %v1014_v35, %v378_v58 }
  0xcb   : > { %v408_v61 = vmax.f32 %v379_v59, 0.0 }
  0xcd   : > { %v437_v62 = vpack.c.bf16 %v408_v61, %v407_v60 }
  0xcf   : > { %516 = vmatmul.bf16.gmra.mxu1 %v437_v62 }
  0xd0   : > { %v381_v63 = vpop.f32.mrf.mxu0 }
  0xd1   : > { %v382_v0 = vadd.f32 %v1014_v35, %v381_v63 }
  0xd3   : > { %v409_v3 = vmax.f32 %v382_v0, 0.0 }
  0xd8   : > { %v383_v1 = vpop.f32.mrf.mxu0 }
  0xd9   : > { %v384_v2 = vadd.f32 %v1014_v35, %v383_v1 }
  0xdb   : > { %v410_v4 = vmax.f32 %v384_v2, 0.0 }
  0xdd   : > { %v438_v5 = vpack.c.bf16 %v410_v4, %v409_v3 }
  0xdf   : > { %521 = vmatmul.bf16.gmra.mxu1 %v438_v5 }
  0xe0   : > { %v386_v6 = vpop.f32.mrf.mxu0 }
  0xe1   : > { %v387_v7 = vadd.f32 %v1014_v35, %v386_v6 }
  0xe3   : > { %v411_v11 = vmax.f32 %v387_v7, 0.0 }
  0xe8   : > { %v388_v8 = vpop.f32.mrf.mxu0 }
  0xe9   : > { %v389_v9 = vadd.f32 %v1014_v35, %v388_v8 }
  0xeb   : > { %v412_v12 = vmax.f32 %v389_v9, 0.0 }
  0xed   : > { %v439_v13 = vpack.c.bf16 %v412_v12, %v411_v11 }
  0xef   : > { %526 = vmatmul.bf16.gmra.mxu1 %v439_v13 }
  0xf0   : > { %v391_v15 = vpop.f32.mrf.mxu0 }
  0xf1   : > { %v392_v18 = vadd.f32 %v1014_v35, %v391_v15 }
  0xf3   : > { %v413_v22 = vmax.f32 %v392_v18, 0.0 }
  0xf8   : > { %v393_v19 = vpop.f32.mrf.mxu0 }
  0xf9   : > { %v394_v20 = vadd.f32 %v1014_v35, %v393_v19 }
  0xfb   : > { %v414_v23 = vmax.f32 %v394_v20, 0.0 }
  0xfd   : > { %v440_v24 = vpack.c.bf16 %v414_v23, %v413_v22 }
  0xff   : > { %531 = vmatmul.bf16.vlgmr.msra.gmra.mxu3 %v440_v24 }
 0x100   : > { %v396_v26 = vpop.f32.mrf.mxu0 }
 0x101   : > { %v397_v29 = vadd.f32 %v1014_v35, %v396_v26 }
 0x103   : > { %v415_v32 = vmax.f32 %v397_v29, 0.0 }
 0x108   : > { %v398_v30 = vpop.f32.mrf.mxu0 }
 0x109   : > { %v399_v31 = vadd.f32 %v1014_v35, %v398_v30 }
 0x10b   : > { %v416_v33 = vmax.f32 %v399_v31, 0.0 }
 0x10d   : > { %v441_v34 = vpack.c.bf16 %v416_v33, %v415_v32 }
 0x10f   : > { %536 = vmatmul.bf16.gmra.mxu3 %v441_v34 }
 0x11c   : > { %v502_v36 = vpop.f32.mrf.mxu1 }
 0x11d   : > { %v503_v38 = vadd.f32 %v889_v37, %v502_v36 }
 0x11f   : > { %v542_v41 = vmax.f32 %v503_v38, 0.0 }
 0x124   : > { %v504_v39 = vpop.f32.mrf.mxu1 }
 0x125   : > { %v505_v40 = vadd.f32 %v889_v37, %v504_v39 }
 0x127   : > { %v543_v42 = vmax.f32 %v505_v40, 0.0 }
 0x129   : > { %v575_v43 = vpack.c.bf16 %v543_v42, %v542_v41 }
 0x12b   : > { %642 = vmatmul.bf16.vlgmr.msra.gmra.mxu2 %v575_v43 }
 0x12c   : > { %v507_v44 = vpop.f32.mrf.mxu1 }
 0x12d   : > { %v508_v45 = vadd.f32 %v889_v37, %v507_v44 }
 0x12f   : > { %v544_v47 = vmax.f32 %v508_v45, 0.0 }
 0x134   : > { %v509_v46 = vpop.f32.mrf.mxu1 }
 0x135   : > { %v510_v35 = vadd.f32 %v889_v37, %v509_v46 }
 0x137   : > { %v545_v48 = vmax.f32 %v510_v35, 0.0 }
 0x139   : > { %v576_v49 = vpack.c.bf16 %v545_v48, %v544_v47 }
 0x13b   : > { %647 = vmatmul.bf16.gmra.mxu2 %v576_v49 }
 0x13c   : > { %v512_v50 = vpop.f32.mrf.mxu1 }
 0x13d   : > { %v513_v51 = vadd.f32 %v889_v37, %v512_v50 }
 0x13f   : > { %v546_v54 = vmax.f32 %v513_v51, 0.0 }
 0x144   : > { %v514_v52 = vpop.f32.mrf.mxu1 }
 0x145   : > { %v515_v53 = vadd.f32 %v889_v37, %v514_v52 }
 0x147   : > { %v547_v55 = vmax.f32 %v515_v53, 0.0 }
 0x149   : > { %v577_v56 = vpack.c.bf16 %v547_v55, %v546_v54 }
 0x14b   : > { %652 = vmatmul.bf16.gmra.mxu2 %v577_v56 }
 0x14c   : > { %v517_v57 = vpop.f32.mrf.mxu1 }
 0x14d   : > { %v518_v58 = vadd.f32 %v889_v37, %v517_v57 }
 0x14f   : > { %v548_v61 = vmax.f32 %v518_v58, 0.0 }
 0x154   : > { %v519_v59 = vpop.f32.mrf.mxu1 }
 0x155   : > { %v520_v60 = vadd.f32 %v889_v37, %v519_v59 }
 0x157   : > { %v549_v62 = vmax.f32 %v520_v60, 0.0 }
 0x159   : > { %v578_v63 = vpack.c.bf16 %v549_v62, %v548_v61 }
 0x15b   : > { %657 = vmatmul.bf16.gmra.mxu2 %v578_v63 }
 0x15c   : > { %v522_v0 = vpop.f32.mrf.mxu1 }
 0x15d   : > { %v523_v1 = vadd.f32 %v889_v37, %v522_v0 }
 0x15f   : > { %v550_v4 = vmax.f32 %v523_v1, 0.0 }
 0x164   : > { %v524_v2 = vpop.f32.mrf.mxu1 }
 0x165   : > { %v525_v3 = vadd.f32 %v889_v37, %v524_v2 }
 0x167   : > { %v551_v5 = vmax.f32 %v525_v3, 0.0 }
 0x169   : > { %v579_v6 = vpack.c.bf16 %v551_v5, %v550_v4 }
 0x16b   : > { %662 = vmatmul.bf16.gmra.mxu2 %v579_v6 }
 0x16c   : > { %v527_v7 = vpop.f32.mrf.mxu1 }
 0x16d   : > { %v528_v8 = vadd.f32 %v889_v37, %v527_v7 }
 0x16f   : > { %v552_v11 = vmax.f32 %v528_v8, 0.0 }
 0x174   : > { %v529_v9 = vpop.f32.mrf.mxu1 }
 0x175   : > { %v530_v10 = vadd.f32 %v889_v37, %v529_v9 }
 0x177   : > { %v553_v12 = vmax.f32 %v530_v10, 0.0 }
 0x179   : > { %v580_v13 = vpack.c.bf16 %v553_v12, %v552_v11 }
 0x17b   : > { %667 = vmatmul.bf16.gmra.mxu2 %v580_v13 }
 0x182   : > { %v532_v14 = vpop.f32.mrf.mxu3 }
 0x183   : > { %v533_v15 = vadd.f32 %v889_v37, %v532_v14 }
 0x185   : > { %v554_v18 = vmax.f32 %v533_v15, 0.0 }
 0x18a   : > { %v534_v16 = vpop.f32.mrf.mxu3 }
 0x18b   : > { %v535_v17 = vadd.f32 %v889_v37, %v534_v16 }
 0x18d   : > { %v555_v19 = vmax.f32 %v535_v17, 0.0 }
 0x18f   : > { %v581_v20 = vpack.c.bf16 %v555_v19, %v554_v18 }
 0x191   : > { %672 = vmatmul.bf16.vlgmr.msrb.gmra.mxu3 %v581_v20 }
 0x192   : > { %v537_v21 = vpop.f32.mrf.mxu3 }
 0x193   : > { %v538_v22 = vadd.f32 %v889_v37, %v537_v21 }
 0x195   : > { %v556_v25 = vmax.f32 %v538_v22, 0.0 }
 0x19a   : > { %v539_v23 = vpop.f32.mrf.mxu3 }
 0x19b   : > { %v540_v24 = vadd.f32 %v889_v37, %v539_v23 }
 0x19d   : > { %v557_v26 = vmax.f32 %v540_v24, 0.0 }
 0x19f   : > { %v582_v27 = vpack.c.bf16 %v557_v26, %v556_v25 }
 0x1a1   : > { %677 = vmatmul.bf16.gmra.mxu3 %v582_v27 }
 0x1ae   : > { %v643_v29 = vpop.f32.mrf.mxu2 }
 0x1af   : > { %v644_v30 = vadd.f32 %v890_v28, %v643_v29 }
 0x1b1   : > { %683 = vst [vmem:[%s1067_s12] sm:$0xff] %v644_v30 }
 0x1b6   : > { %v645_v31 = vpop.f32.mrf.mxu2 }
 0x1b7   : > { %v646_v32 = vadd.f32 %v890_v28, %v645_v31 }
 0x1b9   : > { %684 = vst [vmem:[%s1067_s12 + $0x8] sm:$0xff] %v646_v32 }
 0x1be   : > { %v648_v33 = vpop.f32.mrf.mxu2 }
 0x1bf   : > { %v649_v34 = vadd.f32 %v890_v28, %v648_v33 }
 0x1c1   : > { %685 = vst [vmem:[%s1067_s12 + $0x10] sm:$0xff] %v649_v34 }
 0x1c6   : > { %v650_v36 = vpop.f32.mrf.mxu2 }
 0x1c7   : > { %v651_v37 = vadd.f32 %v890_v28, %v650_v36 }
 0x1c9   : > { %686 = vst [vmem:[%s1067_s12 + $0x18] sm:$0xff] %v651_v37 }
 0x1ce   : > { %v653_v38 = vpop.f32.mrf.mxu2 }
 0x1cf   : > { %v654_v39 = vadd.f32 %v890_v28, %v653_v38 }
 0x1d1   : > { %687 = vst [vmem:[%s1067_s12 + $0x20] sm:$0xff] %v654_v39 }
 0x1d6   : > { %v655_v40 = vpop.f32.mrf.mxu2 }
 0x1d7   : > { %v656_v41 = vadd.f32 %v890_v28, %v655_v40 }
 0x1d9   : > { %688 = vst [vmem:[%s1067_s12 + $0x28] sm:$0xff] %v656_v41 }
 0x1de   : > { %v658_v42 = vpop.f32.mrf.mxu2 }
 0x1df   : > { %v659_v43 = vadd.f32 %v890_v28, %v658_v42 }
 0x1e1   : > { %689 = vst [vmem:[%s1067_s12 + $0x30] sm:$0xff] %v659_v43 }
 0x1e6   : > { %v660_v44 = vpop.f32.mrf.mxu2 }
 0x1e7   : > { %v661_v45 = vadd.f32 %v890_v28, %v660_v44 }
 0x1e9   : > { %690 = vst [vmem:[%s1067_s12 + $0x38] sm:$0xff] %v661_v45 }
 0x1ee   : > { %v663_v46 = vpop.f32.mrf.mxu2 }
 0x1ef   : > { %v664_v35 = vadd.f32 %v890_v28, %v663_v46 }
 0x1f1   : > { %691 = vst [vmem:[%s1067_s12 + $0x40] sm:$0xff] %v664_v35 }
 0x1f6   : > { %v665_v47 = vpop.f32.mrf.mxu2 }
 0x1f7   : > { %v666_v48 = vadd.f32 %v890_v28, %v665_v47 }
 0x1f9   : > { %692 = vst [vmem:[%s1067_s12 + $0x48] sm:$0xff] %v666_v48 }
 0x1fe   : > { %v668_v49 = vpop.f32.mrf.mxu2 }
 0x1ff   : > { %v669_v50 = vadd.f32 %v890_v28, %v668_v49 }
 0x201   : > { %693 = vst [vmem:[%s1067_s12 + $0x50] sm:$0xff] %v669_v50 }
 0x206   : > { %v670_v51 = vpop.f32.mrf.mxu2 }
 0x207   : > { %v671_v52 = vadd.f32 %v890_v28, %v670_v51 }
 0x209   : > { %694 = vst [vmem:[%s1067_s12 + $0x58] sm:$0xff] %v671_v52 }
 0x214   : > { %v673_v53 = vpop.f32.mrf.mxu3 }
 0x215   : > { %v674_v54 = vadd.f32 %v890_v28, %v673_v53 }
 0x217   : > { %695 = vst [vmem:[%s1067_s12 + $0x60] sm:$0xff] %v674_v54 }
 0x21c   : > { %v675_v55 = vpop.f32.mrf.mxu3 }
 0x21d   : > { %v676_v56 = vadd.f32 %v890_v28, %v675_v55 }
 0x21f   : > { %696 = vst [vmem:[%s1067_s12 + $0x68] sm:$0xff] %v676_v56 }
 0x224   : > { %v678_v57 = vpop.f32.mrf.mxu3 }
 0x225   : > { %v679_v58 = vadd.f32 %v890_v28, %v678_v57 }
 0x227   : > { %697 = vst [vmem:[%s1067_s12 + $0x70] sm:$0xff] %v679_v58 }
 0x22c   : > { %v680_v59 = vpop.f32.mrf.mxu3 }
 0x22d   : > { %v681_v60 = vadd.f32 %v890_v28, %v680_v59 }
 0x22f   : > { %698 = vst [vmem:[%s1067_s12 + $0x78] sm:$0xff] %v681_v60 }
 0x230 PF: > { %s17_s24 = sadd.s32 1, %s897_s24  }
 0x231   : > { %p14_p4 = scmp.ge.s32.totalorder %s17_s24, 4  }
 0x233   :  { %16 = sbr.rel (!%p14_p4) target bundleno = 1 (0x1), region = 78 }

</bundles_post_ra>
